<compile_context>
chip_gen: v6e
topology: v6e:2x2x1
jax: 0.10.0
libtpu: 0.0.40
codegen_flags: <defaults>
</compile_context>

<pallas_src>
import functools
import math

import jax
import jax.numpy as jnp
from jax import lax
from jax.experimental import pallas as pl
from jax.experimental.pallas import tpu as pltpu


def _round_up(x, m):
    return (x + m - 1) // m * m


def _lane_tile(x, reps):
    """Replicate an all-lanes-equal [R, 128] block along lanes (cheap lane concat)."""
    if reps == 1:
        return x
    return jnp.concatenate([x] * reps, axis=1)


# ---------------------------------------------------------------------------
# Small-sequence path: packed QKV projection + attention fused in one kernel.
# ---------------------------------------------------------------------------
def _fused_attn_kernel(x_ref, w_ref, o_ref, *, d_out_p, seq_len):
    x = x_ref[...]                                        # [s_p, d_in_p]
    # One wide MXU matmul against the packed [3*d_out_p, d_in_p] weight
    # (contract d_in of x with d_in of W — no transpose materialized).
    qkv = lax.dot_general(x, w_ref[...], (((1,), (1,)), ((), ())),
                          preferred_element_type=jnp.float32).astype(x.dtype)
    q = qkv[:, :d_out_p]                                  # scale folded into W_query
    k = qkv[:, d_out_p:2 * d_out_p]
    v = qkv[:, 2 * d_out_p:3 * d_out_p]

    s = lax.dot_general(q, k, (((1,), (1,)), ((), ())),
                        preferred_element_type=jnp.float32)        # [s_p, s_p]
    if seq_len < s.shape[-1]:   # trace-time: only emitted when padded keys exist
        col = lax.broadcasted_iota(jnp.int32, s.shape, 1)
        s = jnp.where(col < seq_len, s, -1e30)

    m = jnp.max(s, axis=-1, keepdims=True)
    p = jnp.exp(s - m)
    l = jnp.sum(p, axis=-1, keepdims=True)
    out = lax.dot_general(p.astype(v.dtype), v, (((1,), (0,)), ((), ())),
                          preferred_element_type=jnp.float32)
    o_ref[...] = (out * pl.reciprocal(l, approx=True)).astype(o_ref.dtype)


# ---------------------------------------------------------------------------
# Tiled path, kernel 1: packed QKV projection  qkv = x @ W_packed^T
# ---------------------------------------------------------------------------
def _qkv_proj_kernel(x_ref, w_ref, qkv_ref):
    # Single matmul with N = 3*d_out_p: better MXU column occupancy than three
    # N = d_out matmuls, and one wide lane-dense output store.
    qkv_ref[...] = lax.dot_general(
        x_ref[...], w_ref[...], (((1,), (1,)), ((), ())),
        preferred_element_type=jnp.float32).astype(qkv_ref.dtype)


# ---------------------------------------------------------------------------
# Tiled path, kernel 2: flash attention (online softmax over the key axis)
# ---------------------------------------------------------------------------
def _flash_attn_kernel(bias_ref, q_ref, k_ref, v_ref, o_ref, m_sc, l_sc, acc_sc,
                       *, kv_reps, d_reps):
    ki = pl.program_id(1)

    @pl.when(ki == 0)
    def _():
        m_sc[...] = jnp.full_like(m_sc, -jnp.inf)
        l_sc[...] = jnp.zeros_like(l_sc)
        acc_sc[...] = jnp.zeros_like(acc_sc)

    # scores = q @ k^T : contract last dims of both operands (no XLU transpose),
    # f32 accumulation on the MXU.
    s = lax.dot_general(q_ref[...], k_ref[...], (((1,), (1,)), ((), ())),
                        preferred_element_type=jnp.float32)          # [TQ, TK]
    # Additive key-padding bias (0 valid / -1e30 padded): one vadd per element.
    s = s + bias_ref[...]

    m_prev = m_sc[...]                                                # [TQ, 128]
    l_prev = l_sc[...]
    m_cur = jnp.max(s, axis=-1, keepdims=True)                        # [TQ, 1]
    m_next = jnp.maximum(m_prev, m_cur)                               # [TQ, 128]
    alpha = jnp.exp(m_prev - m_next)
    p = jnp.exp(s - _lane_tile(m_next, kv_reps))                      # [TQ, TK]
    l_sc[...] = alpha * l_prev + jnp.sum(p, axis=-1, keepdims=True)
    m_sc[...] = m_next

    alpha_d = _lane_tile(alpha, d_reps)
    acc_sc[...] = alpha_d * acc_sc[...] + lax.dot_general(
        p.astype(v_ref.dtype), v_ref[...], (((1,), (0,)), ((), ())),
        preferred_element_type=jnp.float32)

    @pl.when(ki == pl.num_programs(1) - 1)
    def _():
        inv = pl.reciprocal(l_sc[...], approx=True)                   # EUP slot
        o_ref[...] = (acc_sc[...] * _lane_tile(inv, d_reps)).astype(o_ref.dtype)


# ---------------------------------------------------------------------------
# Wrapper
# ---------------------------------------------------------------------------
def self_attention_v2(x, w_query, w_key, w_value, *, compute_dtype=jnp.bfloat16):
    """SelfAttention_v2 forward. x: [S, d_in]; w_*: [d_out, d_in] (nn.Linear layout)."""
    S, d_in = x.shape
    d_out = w_query.shape[0]
    out_dtype = x.dtype
    cd = jnp.dtype(compute_dtype)
    csize = cd.itemsize
    osize = jnp.dtype(out_dtype).itemsize
    scale = 1.0 / math.sqrt(d_out)      # reference uses sqrt(keys.shape[-1]) = true d_out

    # Lane-dense feature padding (full MXU tiles, unmasked vector stores).
    d_in_p = _round_up(d_in, 128)
    d_out_p = _round_up(d_out, 128)
    s_p8 = _round_up(max(S, 1), 8)

    # Packed QKV weight [3*d_out_p, d_in_p]; softmax scale folded into W_query.
    w_packed = jnp.zeros((3 * d_out_p, d_in_p), cd)
    w_packed = w_packed.at[:d_out, :d_in].set((w_query * scale).astype(cd))
    w_packed = w_packed.at[d_out_p:d_out_p + d_out, :d_in].set(w_key.astype(cd))
    w_packed = w_packed.at[2 * d_out_p:2 * d_out_p + d_out, :d_in].set(w_value.astype(cd))

    def _vmem_limit(est_bytes):
        # Raise the scoped VMEM limit above the default when needed; stay below
        # v7x's 64 MiB physical VMEM per TensorCore.
        return int(min(max(2 * est_bytes, 32 * 2**20), 60 * 2**20))

    # ---------------- small-sequence fused path ----------------
    if s_p8 <= 512:
        s_p = s_p8
        xp = jnp.zeros((s_p, d_in_p), cd).at[:S, :d_in].set(x.astype(cd))
        est = (xp.size * csize + w_packed.size * csize
               + s_p * 3 * d_out_p * 4 + 2 * s_p * s_p * 4 + s_p * d_out_p * osize)
        out = pl.pallas_call(
            functools.partial(_fused_attn_kernel, d_out_p=d_out_p, seq_len=S),
            out_shape=jax.ShapeDtypeStruct((s_p, d_out_p), out_dtype),
            compiler_params=pltpu.CompilerParams(vmem_limit_bytes=_vmem_limit(est)),
        )(xp, w_packed)
        return out[:S, :d_out]

    # ---------------- tiled flash path ----------------
    # Decoupled tiles; padded seq is a multiple of TK so every kv tile holds at
    # least one valid key (keeps the -1e30 padding mask safe).
    tq = 256
    tk = 512 if s_p8 >= 1024 else 256
    s_p = _round_up(s_p8, tk)
    xp = jnp.zeros((s_p, d_in_p), cd).at[:S, :d_in].set(x.astype(cd))

    # Kernel 1: packed QKV projection, tiled over the sequence (computed once).
    tp = 256
    proj_est = 2 * (tp * d_in_p * csize + w_packed.size * csize
                    + tp * 3 * d_out_p * csize)
    qkv = pl.pallas_call(
        _qkv_proj_kernel,
        out_shape=jax.ShapeDtypeStruct((s_p, 3 * d_out_p), cd),
        grid=(s_p // tp,),
        in_specs=[pl.BlockSpec((tp, d_in_p), lambda i: (i, 0)),
                  pl.BlockSpec((3 * d_out_p, d_in_p), lambda i: (0, 0))],
        out_specs=pl.BlockSpec((tp, 3 * d_out_p), lambda i: (i, 0)),
        compiler_params=pltpu.CompilerParams(
            dimension_semantics=("parallel",),
            vmem_limit_bytes=_vmem_limit(proj_est)),
    )(xp, w_packed)

    # Additive key-padding bias: 0 for valid keys, -1e30 for padded ones.
    key_bias = jnp.where(jnp.arange(s_p, dtype=jnp.int32)[None, :] < S,
                         jnp.float32(0.0), jnp.float32(-1e30))

    # Kernel 2: flash attention; q/k/v are column blocks of the qkv slab.
    flash_est = (2 * (tk * 4 + (tq + 2 * tk) * d_out_p * csize + tq * d_out_p * osize)
                 + (2 * tq * 128 + tq * d_out_p) * 4)
    kernel = functools.partial(_flash_attn_kernel,
                               kv_reps=tk // 128, d_reps=d_out_p // 128)
    # Knob: if a profile ever shows exposed K/V DMA at this TK, deepen the k/v
    # input pipelines with pipeline_mode=pl.Buffered(3) rather than shrinking tiles.
    out = pl.pallas_call(
        kernel,
        out_shape=jax.ShapeDtypeStruct((s_p, d_out_p), out_dtype),
        grid=(s_p // tq, s_p // tk),    # (query tiles: parallel, kv tiles: reduction)
        in_specs=[
            pl.BlockSpec((1, tk), lambda qi, ki: (0, ki)),             # key-pad bias
            pl.BlockSpec((tq, d_out_p), lambda qi, ki: (qi, 0)),       # q block
            pl.BlockSpec((tk, d_out_p), lambda qi, ki: (ki, 1)),       # k block
            pl.BlockSpec((tk, d_out_p), lambda qi, ki: (ki, 2)),       # v block
        ],
        out_specs=pl.BlockSpec((tq, d_out_p), lambda qi, ki: (qi, 0)),
        scratch_shapes=[
            pltpu.VMEM((tq, 128), jnp.float32),        # running max m (lane-dense)
            pltpu.VMEM((tq, 128), jnp.float32),        # running denom l (lane-dense)
            pltpu.VMEM((tq, d_out_p), jnp.float32),    # output accumulator
        ],
        compiler_params=pltpu.CompilerParams(
            dimension_semantics=("parallel", "arbitrary"),
            vmem_limit_bytes=_vmem_limit(flash_est)),
    )(key_bias, qkv, qkv, qkv)
    return out[:S, :d_out]


def _reference(x, w_query, w_key, w_value):
    q = x @ w_query.T
    k = x @ w_key.T
    v = x @ w_value.T
    scores = q @ k.T / math.sqrt(k.shape[-1])
    w = jax.nn.softmax(scores, axis=1)   # dim=1 of 2-D scores == key axis
    return w @ v


if __name__ == "__main__":
    # Small shapes consistent with the module: seq=8, d_in=32, d_out=16
    S, d_in, d_out = 8, 32, 16

    key = jax.random.PRNGKey(0)
    kx, kq, kk, kv = jax.random.split(key, 4)

    x = jax.random.normal(kx, (S, d_in), dtype=jnp.float32)

    # nn.Linear default init U(-1/sqrt(d_in), 1/sqrt(d_in)), PyTorch [d_out, d_in]
    # layout; qkv_bias=False -> no bias terms.
    bound = 1.0 / math.sqrt(d_in)
    w_query = jax.random.uniform(kq, (d_out, d_in), jnp.float32, -bound, bound)
    w_key = jax.random.uniform(kk, (d_out, d_in), jnp.float32, -bound, bound)
    w_value = jax.random.uniform(kv, (d_out, d_in), jnp.float32, -bound, bound)

    ref = _reference(x, w_query, w_key, w_value)

    # f32 compute path (approx reciprocal -> slightly loosened tolerance).
    out_f32 = jax.block_until_ready(
        self_attention_v2(x, w_query, w_key, w_value, compute_dtype=jnp.float32))
    assert out_f32.shape == (S, d_out)
    assert jnp.allclose(out_f32, ref, atol=2e-3, rtol=2e-3)

    # bf16 MXU inputs with f32 accumulation (default fast path).
    out_bf16 = jax.block_until_ready(
        self_attention_v2(x, w_query, w_key, w_value, compute_dtype=jnp.bfloat16))
    assert out_bf16.shape == (S, d_out)
    assert jnp.allclose(out_bf16, ref, atol=7e-2, rtol=7e-2)

    # Sequence that is not a multiple of 8 (exercises key masking, fused path).
    S2 = 12
    x2 = jax.random.normal(jax.random.PRNGKey(1), (S2, d_in), dtype=jnp.float32)
    out2 = jax.block_until_ready(
        self_attention_v2(x2, w_query, w_key, w_value, compute_dtype=jnp.float32))
    assert jnp.allclose(out2, _reference(x2, w_query, w_key, w_value),
                        atol=2e-3, rtol=2e-3)

    # Longer sequence -> tiled flash path (decoupled TQ/TK, key-padding bias mask).
    S3 = 640
    x3 = jax.random.normal(jax.random.PRNGKey(2), (S3, d_in), dtype=jnp.float32)
    out3 = jax.block_until_ready(
        self_attention_v2(x3, w_query, w_key, w_value, compute_dtype=jnp.float32))
    assert out3.shape == (S3, d_out)
    assert jnp.allclose(out3, _reference(x3, w_query, w_key, w_value),
                        atol=2e-3, rtol=2e-3)

    print("KERNEL_OK")
</pallas_src>

<mosaic_0001>
module attributes {stable_mosaic.version = 11 : i64} {
  func.func @_fused_attn_kernel(%arg0: memref<8x128xf32, #tpu.memory_space<vmem>>, %arg1: memref<384x128xf32, #tpu.memory_space<vmem>>, %arg2: memref<8x128xf32, #tpu.memory_space<vmem>>) attributes {dimension_semantics = [], scalar_prefetch = 0 : i64, scratch_operands = 0 : i64, tpu.core_type = #tpu.core_type<tc>} {
    %c0 = arith.constant 0 : index
    %c0_0 = arith.constant 0 : index
    %0 = vector.load %arg0[%c0, %c0_0] : memref<8x128xf32, #tpu.memory_space<vmem>>, vector<8x128xf32>
    %c0_1 = arith.constant 0 : index
    %c0_2 = arith.constant 0 : index
    %1 = vector.load %arg1[%c0_1, %c0_2] : memref<384x128xf32, #tpu.memory_space<vmem>>, vector<384x128xf32>
    %cst = arith.constant dense<0.000000e+00> : vector<8x384xf32>
    %2 = tpu.matmul %0, %1, %cst {dimension_numbers = #tpu.dot_dimension_numbers<[1], [1], [0], [0], [0, 0, 1, 0], [], []>} : vector<8x128xf32>, vector<384x128xf32>, vector<8x384xf32> -> vector<8x384xf32>
    %3 = vector.extract_strided_slice %2 {offsets = [0, 0], sizes = [8, 128], strides = [1, 1]} : vector<8x384xf32> to vector<8x128xf32>
    %4 = vector.extract_strided_slice %2 {offsets = [0, 128], sizes = [8, 128], strides = [1, 1]} : vector<8x384xf32> to vector<8x128xf32>
    %5 = vector.extract_strided_slice %2 {offsets = [0, 256], sizes = [8, 128], strides = [1, 1]} : vector<8x384xf32> to vector<8x128xf32>
    %cst_3 = arith.constant dense<0.000000e+00> : vector<8x8xf32>
    %6 = tpu.matmul %3, %4, %cst_3 {dimension_numbers = #tpu.dot_dimension_numbers<[1], [1], [0], [0], [0, 0, 1, 0], [], []>} : vector<8x128xf32>, vector<8x128xf32>, vector<8x8xf32> -> vector<8x8xf32>
    %cst_4 = arith.constant dense<0xFF800000> : vector<8xf32>
    %7 = vector.multi_reduction <maximumf>, %6, %cst_4 [1] : vector<8x8xf32> to vector<8xf32>
    %8 = vector.shape_cast %7 : vector<8xf32> to vector<8x1xf32>
    %9 = vector.broadcast %8 : vector<8x1xf32> to vector<8x8xf32>
    %10 = arith.subf %6, %9 : vector<8x8xf32>
    %11 = math.exp %10 : vector<8x8xf32>
    %cst_5 = arith.constant dense<0.000000e+00> : vector<8xf32>
    %12 = vector.multi_reduction <add>, %11, %cst_5 [1] : vector<8x8xf32> to vector<8xf32>
    %13 = vector.shape_cast %12 : vector<8xf32> to vector<8x1xf32>
    %cst_6 = arith.constant dense<0.000000e+00> : vector<8x128xf32>
    %14 = tpu.matmul %11, %5, %cst_6 {dimension_numbers = #tpu.dot_dimension_numbers<[1], [0], [0], [1], [0, 0, 1, 1], [], []>} : vector<8x8xf32>, vector<8x128xf32>, vector<8x128xf32> -> vector<8x128xf32>
    %15 = tpu.reciprocal %13 {approx = true} : vector<8x1xf32> -> vector<8x1xf32>
    %16 = vector.broadcast %15 : vector<8x1xf32> to vector<8x128xf32>
    %17 = arith.mulf %14, %16 : vector<8x128xf32>
    %c0_7 = arith.constant 0 : index
    %c0_8 = arith.constant 0 : index
    %18 = vector.load %arg2[%c0_7, %c0_8] : memref<8x128xf32, #tpu.memory_space<vmem>>, vector<8x128xf32>
    tpu.vector_store %arg2[%c0_7, %c0_8], %17 {strides = array<i32>} : memref<8x128xf32, #tpu.memory_space<vmem>>, vector<8x128xf32>,
    return
  }
}

</mosaic_0001>

<bundles_post_ra>
// kernel: tpu_custom_call.1
= control target key start
LH: loop header
LB: loop body
LE: loop exit
PB: predicated region body
PF: predicated region fallthrough
CT: control target
= control target key end

     0   :  { %7 = vsyncpa [#allocation3], 0  ;;  %s617_s0 = inlined_call_operand.hbm [shape: f32[8,128], index: 0, kind: input, shape index: {}]   ;;  %s618_s1 = inlined_call_operand.hbm [shape: f32[384,128], index: 1, kind: input, shape index: {}]   ;;  %s619_s2 = inlined_call_operand.hbm [shape: f32[8,128], index: 2, kind: output, shape index: {}]  }
   0x1   :  { %8 = vsyncpa [#allocation6], 0 }
   0x2   :  { %9 = vsyncpa [#allocation4], 0  ;;  %s578_s9 = smov [#allocation2]   ;;  %s579_s11 = smov [#allocation5]  }
   0x3   :  { %s16_s10 = sshll.u32 %s578_s9, 4  ;;  %s25_s12 = sshll.u32 %s579_s11, 4  ;;  %s17_s10 = int_to_ptr.vmem [resolvable:$true] %s16_s10  ;;  %s26_s12 = int_to_ptr.vmem [resolvable:$true] %s25_s12 }
   0x4   :  { %s520_s13 = scalar_lea.vmem %s17_s10, 128  ;;  %p525_p1 = scmp.lt.s32.totalorder %s17_s10, %s17_s10 }
   0x5   :  { %p521_p0 = scmp.ne.s32.totalorder %s17_s10, %s520_s13  ;;  %p526_p2 = scmp.lt.s32.totalorder %s520_s13, %s520_s13 }
   0x7   :  { %p527_p3 = por %p526_p2, %p525_p1 }
   0x9   :  { %p528_p4 = pnand %p527_p3, %p521_p0 }
   0xb   :  { %531 = shalt.err (!%p528_p4)
}
   0xc   :  { %19 = dma.hbm_to_vmem [thread:$0]  %s617_s0, 128, %s17_s10, [#allocation3]  }
   0xd   :  { %s540_s16 = scalar_lea.vmem %s26_s12, 6144  ;;  %p545_p6 = scmp.lt.s32.totalorder %s26_s12, %s26_s12 }
   0xe   :  { %p541_p5 = scmp.ne.s32.totalorder %s26_s12, %s540_s16  ;;  %p546_p7 = scmp.lt.s32.totalorder %s540_s16, %s540_s16 }
  0x10   :  { %p547_p8 = por %p546_p7, %p545_p6 }
  0x12   :  { %p548_p9 = pnand %p547_p8, %p541_p5 }
  0x14   :  { %551 = shalt.err (!%p548_p9)
}
  0x15   :  { %s580_s17 = smov 128   ;;  %s581_s18 = smov 8  }
  0x16   :  { %31 = dma.hbm_to_vmem [thread:$0]  %s618_s1, 6144, %s26_s12, [#allocation6], %s580_s17, %s580_s17, %s581_s18  }
  0x17   :  { %572 = dma.done.wait [#allocation3], 128  }
  0x18   :  { %573 = vsyncadd [#allocation3], 4294967168 }
  0x19   :  { %574 = dma.done.wait [#allocation6], 6144  }
  0x1a   :  { %575 = vsyncadd [#allocation6], 4294961152  ;;  %v70_v0 = vld [vmem:[#allocation5 + $0xf8] sm:$0xff]  ;;  %v69_v2 = vld [vmem:[#allocation5 + $0xf0] sm:$0xff]  ;;  %v582_v33 = vmov 0.0   ;;  %vm583_vm0 = vmmov 0  }
  0x1b   :  { %v54_v1 = vld [vmem:[#allocation5 + $0x78] sm:$0xff]  ;;  %401 = vmatprep.subr.mxu0 %v70_v0  ;;  %v53_v3 = vld [vmem:[#allocation5 + $0x70] sm:$0xff]  ;;  %v68_v4 = vld [vmem:[#allocation5 + $0xe8] sm:$0xff]  ;;  %456 = vmatprep.subr.mxu1 %v582_v33  ;;  %vm298_vm1 = vcmask 64512   ;;  %s584_s0 = smov [#allocation7]  }
  0x1c   :  { %402 = vmatpush3.xpose.msra.mxu0 %v54_v1  ;;  %v52_v5 = vld [vmem:[#allocation5 + $0x68] sm:$0xff]  ;;  %v67_v6 = vld [vmem:[#allocation5 + $0xe0] sm:$0xff]  ;;  %v606_v7 = vld [vmem:[#allocation2] sm:$0xff]  ;;  %488 = vmatprep.mubr.msk.f32.mxu1 %vm583_vm0, %v582_v33  ;;  %s390_s1 = sshll.u32 %s584_s0, 4  ;;  %s391_s1 = int_to_ptr.vmem [resolvable:$true] %s390_s1 }
  0x1d   :  { %403 = vmatprep.subr.mxu0 %v69_v2  ;;  %v51_v8 = vld [vmem:[#allocation5 + $0x60] sm:$0xff]  ;;  %433 = vmatprep.mubr.f32.mxu0 %v606_v7  ;;  %v66_v9 = vld [vmem:[#allocation5 + $0xd8] sm:$0xff]  ;;  %v65_v11 = vld [vmem:[#allocation5 + $0xd0] sm:$0xff]  ;;  %s552_s21 = scalar_lea.vmem %s391_s1, 128  ;;  %p557_p11 = scmp.lt.s32.totalorder %s391_s1, %s391_s1 }
  0x1e   :  { %v50_v10 = vld [vmem:[#allocation5 + $0x58] sm:$0xff]  ;;  %v49_v12 = vld [vmem:[#allocation5 + $0x50] sm:$0xff]  ;;  %v64_v13 = vld [vmem:[#allocation5 + $0xc8] sm:$0xff]  ;;  %p553_p10 = scmp.ne.s32.totalorder %s391_s1, %s552_s21  ;;  %p558_p12 = scmp.lt.s32.totalorder %s552_s21, %s552_s21 }
  0x1f   :  { %v48_v14 = vld [vmem:[#allocation5 + $0x48] sm:$0xff]  ;;  %v63_v15 = vld [vmem:[#allocation5 + $0xc0] sm:$0xff]  ;;  %v62_v17 = vld [vmem:[#allocation5 + $0xb8] sm:$0xff] }
  0x20   :  { %404 = vmatpush3.xpose.msra.mxu0 %v53_v3  ;;  %v47_v16 = vld [vmem:[#allocation5 + $0x40] sm:$0xff]  ;;  %v46_v18 = vld [vmem:[#allocation5 + $0x38] sm:$0xff]  ;;  %v61_v19 = vld [vmem:[#allocation5 + $0xb0] sm:$0xff]  ;;  %p559_p13 = por %p558_p12, %p557_p11 }
  0x21   :  { %405 = vmatprep.subr.mxu0 %v68_v4  ;;  %v45_v20 = vld [vmem:[#allocation5 + $0x30] sm:$0xff]  ;;  %v60_v21 = vld [vmem:[#allocation5 + $0xa8] sm:$0xff]  ;;  %v59_v23 = vld [vmem:[#allocation5 + $0xa0] sm:$0xff] }
  0x22   :  { %v44_v22 = vld [vmem:[#allocation5 + $0x28] sm:$0xff]  ;;  %v43_v24 = vld [vmem:[#allocation5 + $0x20] sm:$0xff]  ;;  %v58_v25 = vld [vmem:[#allocation5 + $0x98] sm:$0xff]  ;;  %p560_p0 = pnand %p559_p13, %p553_p10 }
  0x23   :  { %v42_v26 = vld [vmem:[#allocation5 + $0x18] sm:$0xff]  ;;  %v57_v27 = vld [vmem:[#allocation5 + $0x90] sm:$0xff]  ;;  %v56_v29 = vld [vmem:[#allocation5 + $0x88] sm:$0xff] }
  0x24   :  { %406 = vmatpush3.xpose.msra.mxu0 %v52_v5  ;;  %v41_v28 = vld [vmem:[#allocation5 + $0x10] sm:$0xff]  ;;  %v40_v30 = vld [vmem:[#allocation5 + $0x8] sm:$0xff]  ;;  %v55_v31 = vld [vmem:[#allocation5 + $0x80] sm:$0xff] }
  0x25   :  { %407 = vmatprep.subr.mxu0 %v67_v6  ;;  %v39_v32 = vld [vmem:[#allocation5] sm:$0xff]  ;;  %v86_v34 = vld [vmem:[#allocation5 + $0x178] sm:$0xff]  ;;  %v85_v35 = vld [vmem:[#allocation5 + $0x170] sm:$0xff] }
  0x26   :  { %457 = vmatpush3.xpose.msra.mxu1 %v86_v34  ;;  %v84_v36 = vld [vmem:[#allocation5 + $0x168] sm:$0xff]  ;;  %v83_v37 = vld [vmem:[#allocation5 + $0x160] sm:$0xff]  ;;  %v82_v38 = vld [vmem:[#allocation5 + $0x158] sm:$0xff] }
  0x27   :  { %458 = vmatprep.subr.mxu1 %v582_v33  ;;  %v81_v39 = vld [vmem:[#allocation5 + $0x150] sm:$0xff]  ;;  %v80_v40 = vld [vmem:[#allocation5 + $0x148] sm:$0xff]  ;;  %v79_v41 = vld [vmem:[#allocation5 + $0x140] sm:$0xff] }
  0x28   :  { %408 = vmatpush3.xpose.msra.mxu0 %v51_v8  ;;  %v78_v42 = vld [vmem:[#allocation5 + $0x138] sm:$0xff]  ;;  %v77_v43 = vld [vmem:[#allocation5 + $0x130] sm:$0xff]  ;;  %v76_v44 = vld [vmem:[#allocation5 + $0x128] sm:$0xff] }
  0x29   :  { %409 = vmatprep.subr.mxu0 %v66_v9  ;;  %v75_v45 = vld [vmem:[#allocation5 + $0x120] sm:$0xff]  ;;  %v74_v46 = vld [vmem:[#allocation5 + $0x118] sm:$0xff]  ;;  %v73_v47 = vld [vmem:[#allocation5 + $0x110] sm:$0xff] }
  0x2a   :  { %459 = vmatpush3.xpose.msra.mxu1 %v85_v35  ;;  %v72_v48 = vld [vmem:[#allocation5 + $0x108] sm:$0xff]  ;;  %v71_v49 = vld [vmem:[#allocation5 + $0x100] sm:$0xff] }
  0x2b   :  { %460 = vmatprep.subr.mxu1 %v582_v33 }
  0x2c   :  { %410 = vmatpush3.xpose.msra.mxu0 %v50_v10 }
  0x2d   :  { %411 = vmatprep.subr.mxu0 %v65_v11 }
  0x2e   :  { %461 = vmatpush3.xpose.msra.mxu1 %v84_v36 }
  0x2f   :  { %462 = vmatprep.subr.mxu1 %v582_v33 }
  0x30   :  { %412 = vmatpush3.xpose.msra.mxu0 %v49_v12 }
  0x31   :  { %413 = vmatprep.subr.mxu0 %v64_v13 }
  0x32   :  { %463 = vmatpush3.xpose.msra.mxu1 %v83_v37 }
  0x33   :  { %464 = vmatprep.subr.mxu1 %v582_v33 }
  0x34   :  { %414 = vmatpush3.xpose.msra.mxu0 %v48_v14 }
  0x35   :  { %415 = vmatprep.subr.mxu0 %v63_v15 }
  0x36   :  { %465 = vmatpush3.xpose.msra.mxu1 %v82_v38 }
  0x37   :  { %466 = vmatprep.subr.mxu1 %v582_v33 }
  0x38   :  { %416 = vmatpush3.xpose.msra.mxu0 %v47_v16 }
  0x39   :  { %417 = vmatprep.subr.mxu0 %v62_v17 }
  0x3a   :  { %467 = vmatpush3.xpose.msra.mxu1 %v81_v39 }
  0x3b   :  { %468 = vmatprep.subr.mxu1 %v582_v33 }
  0x3c   :  { %418 = vmatpush3.xpose.msra.mxu0 %v46_v18 }
  0x3d   :  { %419 = vmatprep.subr.mxu0 %v61_v19 }
  0x3e   :  { %469 = vmatpush3.xpose.msra.mxu1 %v80_v40 }
  0x3f   :  { %470 = vmatprep.subr.mxu1 %v582_v33 }
  0x40   :  { %420 = vmatpush3.xpose.msra.mxu0 %v45_v20 }
  0x41   :  { %421 = vmatprep.subr.mxu0 %v60_v21 }
  0x42   :  { %471 = vmatpush3.xpose.msra.mxu1 %v79_v41 }
  0x43   :  { %472 = vmatprep.subr.mxu1 %v582_v33 }
  0x44   :  { %422 = vmatpush3.xpose.msra.mxu0 %v44_v22 }
  0x45   :  { %423 = vmatprep.subr.mxu0 %v59_v23 }
  0x46   :  { %473 = vmatpush3.xpose.msra.mxu1 %v78_v42 }
  0x47   :  { %474 = vmatprep.subr.mxu1 %v582_v33 }
  0x48   :  { %424 = vmatpush3.xpose.msra.mxu0 %v43_v24 }
  0x49   :  { %425 = vmatprep.subr.mxu0 %v58_v25 }
  0x4a   :  { %475 = vmatpush3.xpose.msra.mxu1 %v77_v43 }
  0x4b   :  { %476 = vmatprep.subr.mxu1 %v582_v33 }
  0x4c   :  { %426 = vmatpush3.xpose.msra.mxu0 %v42_v26 }
  0x4d   :  { %427 = vmatprep.subr.mxu0 %v57_v27 }
  0x4e   :  { %477 = vmatpush3.xpose.msra.mxu1 %v76_v44 }
  0x4f   :  { %478 = vmatprep.subr.mxu1 %v582_v33 }
  0x50   :  { %428 = vmatpush3.xpose.msra.mxu0 %v41_v28 }
  0x51   :  { %429 = vmatprep.subr.mxu0 %v56_v29 }
  0x52   :  { %479 = vmatpush3.xpose.msra.mxu1 %v75_v45 }
  0x53   :  { %480 = vmatprep.subr.mxu1 %v582_v33 }
  0x54   :  { %430 = vmatpush3.xpose.msra.mxu0 %v40_v30 }
  0x55   :  { %431 = vmatprep.subr.mxu0 %v55_v31 }
  0x56   :  { %481 = vmatpush3.xpose.msra.mxu1 %v74_v46 }
  0x57   :  { %482 = vmatprep.subr.mxu1 %v582_v33 }
  0x58   :  { %432 = vmatpush3.xpose.msra.mxu0 %v39_v32 }
  0x59   :  { %491 = vmatprep.subr.mxu0 %v582_v33 }
  0x5a   :  { %483 = vmatpush3.xpose.msra.mxu1 %v73_v47 }
  0x5b   :  { %434 = vmatmul.mubr.f32.vlgmr.msra.gmra.mxu0 %v606_v7  ;;  %484 = vmatprep.subr.mxu1 %v582_v33 }
  0x5c   :  { %493 = vmatprep.mubr.msk.f32.mxu0 %vm583_vm0, %v582_v33 }
  0x5e   :  { %485 = vmatpush3.xpose.msra.mxu1 %v72_v48 }
  0x5f   :  { %486 = vmatprep.subr.mxu1 %v582_v33 }
  0x62   :  { %487 = vmatpush3.xpose.msra.mxu1 %v71_v49 }
  0x63   :  { %496 = vmatprep.subr.mxu1 %v582_v33 }
  0x65   :  { %489 = vmatmul.mubr.f32.vlgmr.msra.gmra.mxu1 %v606_v7 }
  0x66   :  { %498 = vmatprep.mubr.msk.f32.mxu1 %vm583_vm0, %v582_v33 }
 0x11b   :  { %v153_v50 = vpop.f32.mrf.mxu0 }
 0x11d   :  { %v155_v51 = vpop.f32.mrf.mxu0 }
 0x11e   :  { %492 = vmatpush3.xpose.msra.mxu0 %v155_v51 }
 0x121   :  { %494 = vmatmul.mubr.f32.vlgmr.msra.gmra.mxu0 %v153_v50 }
 0x125   :  { %v224_v55 = vpop.f32.mrf.mxu1 }
 0x126   :  { %497 = vmatpush3.msra.mxu1 %v224_v55 }
 0x127   :  { %v490_v56 = vpop.f32.mrf.mxu1 }
 0x1e1   :  { %v294_v52 = vpop.f32.mrf.mxu0 }
 0x1e2   :  { %v299_v53 = vsel %vm298_vm1, %v294_v52, -inf }
 0x1e3   :  { %300 = vmax.xlane.f32.xlu0 %v299_v53  ;;  %v495_v54 = vpop.f32.mrf.mxu0 }
 0x26c   :  { %v301_v57 = vpop.xlane.xlu0 %300 }
 0x26d   :  { %v302_v58 = vsub.f32 %v294_v52, %v301_v57 }
 0x26f   :  { %v303_v59 = vmul.f32 1.442695, %v302_v58 }
 0x271   :  { %508 = vpow2.f32 %v303_v59 }
 0x27e   :  { %v509_v60 = vpop.eup %508 }
 0x27f   :  { %499 = vmatmul.mubr.msk.f32.vlgmr.msra.gmra.mxu1 %vm298_vm1, %v509_v60  ;;  %v305_v61 = vsel %vm298_vm1, %v509_v60, 0.0 }
 0x280   :  { %306 = vadd.xlane.f32.xlu0 %v305_v61 }
 0x309   :  { %v307_v62 = vpop.xlane.xlu0 %306 }
 0x30a   :  { %510 = vrcp.f32 %v307_v62 }
 0x317   :  { %v511_v63 = vpop.eup %510 }
 0x33f   :  { %v377_v0 = vpop.f32.mrf.mxu1 }
 0x340   :  { %v382_v1 = vmul.f32 %v511_v63, %v377_v0 }
 0x341   :  { %v500_v2 = vpop.f32.mrf.mxu1 }
 0x342   :  { %383 = vst [vmem:[#allocation7] sm:$0xff] %v382_v1 }
 0x343   :  { %563 = shalt.err (!%p560_p0)
}
 0x344   :  { %393 = dma.vmem_to_hbm [thread:$0]  %s391_s1, 128, %s619_s2, [#allocation4]  }
 0x345   :  { %576 = dma.done.wait [#allocation4], 128  }
 0x346   :  { %577 = vsyncadd [#allocation4], 4294967168 }
 0x347   :  { %397 = vsyncpa [#allocation3], 1 }
 0x348   :  { %398 = vsyncpa [#allocation6], 1 }
 0x349   :  { %399 = vsyncpa [#allocation4], 1 }

</bundles_post_ra>
